<compile_context>
chip_gen: v5e
topology: v5e:2x2
jax: 0.10.0
libtpu: 0.0.40
codegen_flags: <defaults>
</compile_context>

<pallas_src>
import jax
import jax.numpy as jnp
from jax.experimental import pallas as pl
from jax.experimental.pallas import tpu as pltpu

_LANE = 128
_MAX_TILE_N = 2048  # safe for v7x 64 MiB VMEM; still roofline-friendly on v5e/v6e


def _nconv_kernel(at_ref, x_ref, o_ref):
    # at_ref: (W, V), x_ref: (V, TILE_N), o_ref: (W, TILE_N)
    o_ref[...] = jnp.dot(
        at_ref[...], x_ref[...],
        preferred_element_type=jnp.float32,
    ).astype(o_ref.dtype)


def nconv(x, A):
    """x: (N, C, V, L), A: (V, W) -> (N, C, W, L)."""
    N, C, V, L = x.shape
    Va, W = A.shape
    assert Va == V

    ncl = N * C * L
    # Lane-dense reformulation: X2d[v, (n,c,l)] = x[n,c,v,l]
    x2d = jnp.transpose(x, (2, 0, 1, 3)).reshape(V, ncl)
    a_t = A.T  # (W, V) — MXU-friendly orientation, transposed once in wrapper.

    # Pick a lane tile: one big block for small problems, 2048-wide tiles
    # (multiple of 128) otherwise; pad the lane axis to a whole number of tiles.
    if ncl <= 2 * _MAX_TILE_N:
        tile_n = pl.cdiv(ncl, _LANE) * _LANE
    else:
        tile_n = _MAX_TILE_N
    ncl_pad = pl.cdiv(ncl, tile_n) * tile_n
    if ncl_pad != ncl:
        x2d = jnp.pad(x2d, ((0, 0), (0, ncl_pad - ncl)))

    grid = (ncl_pad // tile_n,)

    itemsize = jnp.dtype(x.dtype).itemsize
    cost = pl.CostEstimate(
        flops=2 * N * C * V * W * L,
        transcendentals=0,
        bytes_accessed=(N * C * V * L + V * W + N * C * W * L) * itemsize,
    )

    out2d = pl.pallas_call(
        _nconv_kernel,
        out_shape=jax.ShapeDtypeStruct((W, ncl_pad), x.dtype),
        grid_spec=pltpu.PrefetchScalarGridSpec(
            num_scalar_prefetch=0,
            grid=grid,
            in_specs=[
                pl.BlockSpec((W, V), lambda j: (0, 0)),        # A^T resident
                pl.BlockSpec((V, tile_n), lambda j: (0, j)),   # streamed x tile
            ],
            out_specs=pl.BlockSpec((W, tile_n), lambda j: (0, j)),
        ),
        compiler_params=pltpu.CompilerParams(
            dimension_semantics=("parallel",),  # independent tiles -> megacore on v7x
        ),
        cost_estimate=cost,
    )(a_t, x2d)

    out2d = out2d[:, :ncl]                     # drop lane padding
    return out2d.reshape(W, N, C, L).transpose(1, 2, 0, 3)


if __name__ == "__main__":
    key = jax.random.PRNGKey(0)
    kx, ka = jax.random.split(key)

    N, C, V, L = 2, 4, 16, 8   # batch, channels, num nodes, sequence length
    W = V                      # square adjacency, as typical for nconv

    x = jax.random.normal(kx, (N, C, V, L), dtype=jnp.float32)
    A = jax.random.normal(ka, (V, W), dtype=jnp.float32)

    out = nconv(x, A)
    out = jax.block_until_ready(out)

    # Reference check against plain einsum (same as the PyTorch forward).
    ref = jnp.einsum("ncvl,vw->ncwl", x, A)
    assert out.shape == (N, C, W, L)
    assert jnp.allclose(out, ref, atol=1e-4, rtol=1e-4)

    print("KERNEL_OK")
</pallas_src>

<mosaic_0001>
module attributes {stable_mosaic.version = 11 : i64} {
  func.func @_nconv_kernel(%arg0: i32, %arg1: memref<16x16xf32, #tpu.memory_space<vmem>>, %arg2: memref<16x128xf32, #tpu.memory_space<vmem>>, %arg3: memref<16x128xf32, #tpu.memory_space<vmem>>) attributes {dimension_semantics = [#tpu.dimension_semantics<parallel>], iteration_bounds = array<i64: 1>, scalar_prefetch = 0 : i64, scratch_operands = 0 : i64, tpu.core_type = #tpu.core_type<tc>, window_params = [{pipeline_mode = #tpu.pipeline_mode<synchronous>, transform_indices = @transform_0, window_bounds = array<i64: 16, 16>}, {transform_indices = @transform_1, window_bounds = array<i64: 16, 128>}, {transform_indices = @transform_2, window_bounds = array<i64: 16, 128>}]} {
    %c0 = arith.constant 0 : index
    %c0_0 = arith.constant 0 : index
    %0 = vector.load %arg1[%c0, %c0_0] : memref<16x16xf32, #tpu.memory_space<vmem>>, vector<16x16xf32>
    %c0_1 = arith.constant 0 : index
    %c0_2 = arith.constant 0 : index
    %1 = vector.load %arg2[%c0_1, %c0_2] : memref<16x128xf32, #tpu.memory_space<vmem>>, vector<16x128xf32>
    %cst = arith.constant dense<0.000000e+00> : vector<16x128xf32>
    %2 = tpu.matmul %0, %1, %cst {dimension_numbers = #tpu.dot_dimension_numbers<[1], [0], [0], [1], [0, 0, 1, 1], [], []>} : vector<16x16xf32>, vector<16x128xf32>, vector<16x128xf32> -> vector<16x128xf32>
    %c0_3 = arith.constant 0 : index
    %c0_4 = arith.constant 0 : index
    %3 = vector.load %arg3[%c0_3, %c0_4] : memref<16x128xf32, #tpu.memory_space<vmem>>, vector<16x128xf32>
    tpu.vector_store %arg3[%c0_3, %c0_4], %2 {strides = array<i32>} : memref<16x128xf32, #tpu.memory_space<vmem>>, vector<16x128xf32>,
    return
  }
  func.func @transform_0(%arg0: i32) -> (i32, i32) {
    %c0_i32 = arith.constant 0 : i32
    %c0_i32_0 = arith.constant 0 : i32
    %c0_i32_1 = arith.constant 0 : i32
    return %c0_i32, %c0_i32_0 : i32, i32
  }
  func.func @transform_1(%arg0: i32) -> (i32, i32) {
    %c0_i32 = arith.constant 0 : i32
    %c0_i32_0 = arith.constant 0 : i32
    return %c0_i32, %arg0 : i32, i32
  }
  func.func @transform_2(%arg0: i32) -> (i32, i32) {
    %c0_i32 = arith.constant 0 : i32
    %c0_i32_0 = arith.constant 0 : i32
    return %c0_i32, %arg0 : i32, i32
  }
}

</mosaic_0001>

<bundles_post_ra>
// kernel: tpu_custom_call.1
= control target key start
LH: loop header
LB: loop body
LE: loop exit
PB: predicated region body
PF: predicated region fallthrough
CT: control target
= control target key end

     0   :  { %7 = vsyncpa [#allocation3], 0  ;;  %s225_s0 = inlined_call_operand.hbm [shape: f32[16,16], index: 0, kind: input, shape index: {}]   ;;  %s226_s1 = inlined_call_operand.hbm [shape: f32[16,128], index: 1, kind: input, shape index: {}]   ;;  %s227_s2 = inlined_call_operand.hbm [shape: f32[16,128], index: 2, kind: output, shape index: {}]  }
   0x1   :  { %8 = vsyncpa [#allocation6], 0 }
   0x2   :  { %9 = vsyncpa [#allocation4], 0  ;;  %s14_s11 = sshll.u32 %s225_s0, 4  ;;  %s187_s12 = smov [#allocation2]   ;;  %s15_s11 = int_to_ptr.hbm [resolvable:$true] %s14_s11 }
   0x3   :  { %s16_s13 = sshll.u32 %s187_s12, 4  ;;  %s27_s16 = sshll.u32 %s226_s1, 4  ;;  %s17_s13 = int_to_ptr.vmem [resolvable:$true] %s16_s13  ;;  %s28_s16 = int_to_ptr.hbm [resolvable:$true] %s27_s16 }
   0x4   :  { %s188_s17 = smov 128   ;;  %s189_s18 = smov 8  }
   0x5   :  { %22 = dma.hbm_to_vmem [thread:$0]  %s15_s11, 256, %s17_s13, [#allocation3], %s188_s17, %s188_s17, %s189_s18  }
   0x6   :  { %s190_s19 = smov [#allocation5]  }
   0x7   :  { %s29_s20 = sshll.u32 %s190_s19, 4  ;;  %s30_s20 = int_to_ptr.vmem [resolvable:$true] %s29_s20 }
   0x8   :  { %35 = dma.hbm_to_vmem [thread:$0]  %s28_s16, 256, %s30_s20, [#allocation6], %s188_s17, %s188_s17, %s189_s18  }
   0x9   :  { %181 = dma.done.wait [#allocation3], 256  }
   0xa   :  { %182 = vsyncadd [#allocation3], 4294967040 }
   0xb   :  { %183 = dma.done.wait [#allocation6], 256  }
   0xc   :  { %184 = vsyncadd [#allocation6], 4294967040  ;;  %v47_v0 = vld [vmem:[#allocation5 + $0x8] sm:$0xff]  ;;  %v46_v1 = vld [vmem:[#allocation5] sm:$0xff]  ;;  %vm48_vm0 = vcmask 130048   ;;  %s191_s0 = smov [#allocation7]  }
   0xd   :  { %69 = vmatpush.msra.mxu0 %v47_v0  ;;  %102 = vmatpush.msra.mxu1 %v47_v0  ;;  %v44_v2 = vld [vmem:[#allocation2] sm:$0xff]  ;;  %v45_v3 = vld [vmem:[#allocation2 + $0x8] sm:$0xff]  ;;  %s84_s1 = sshll.u32 %s191_s0, 4  ;;  %s86_s23 = sshll.u32 %s227_s2, 4  ;;  %s85_s1 = int_to_ptr.vmem [resolvable:$true] %s84_s1  ;;  %s87_s23 = int_to_ptr.hbm [resolvable:$true] %s86_s23 }
   0xf   :  { %70 = vmatpush.msra.mxu0 %v46_v1  ;;  %103 = vmatpush.msra.mxu1 %v46_v1 }
  0x10   :  { %100 = vmatmul.msk.f32.vlgmr.msra.gmra.mxu0 %vm48_vm0, %v44_v2  ;;  %101 = vmatmul.msk.f32.vlgmr.msra.gmra.mxu1 %vm48_vm0, %v45_v3 }
  0x8d   :  { %v72_v4 = vpop.f32.mrf.mxu0  ;;  %v75_v5 = vpop.f32.mrf.mxu1 }
  0x8e   :  { %78 = vst [vmem:[#allocation7] sm:$0xff] %v72_v4 }
  0x8f   :  { %79 = vst [vmem:[#allocation7 + $0x8] sm:$0xff] %v75_v5 }
  0x90   :  { %92 = dma.vmem_to_hbm [thread:$0]  %s85_s1, 256, %s87_s23, [#allocation4], %s188_s17, %s188_s17, %s189_s18  }
  0x91   :  { %185 = dma.done.wait [#allocation4], 256  }
  0x92   :  { %186 = vsyncadd [#allocation4], 4294967040 }
  0x93   :  { %97 = vsyncpa [#allocation3], 1 }
  0x94   :  { %98 = vsyncpa [#allocation6], 1 }
  0x95   :  { %99 = vsyncpa [#allocation4], 1 }

</bundles_post_ra>
